<compile_context>
chip_gen: v6e
topology: v6e:2x2x1
jax: 0.10.0
libtpu: 0.0.40
codegen_flags: <defaults>
</compile_context>

<pallas_src>
import math
from functools import partial

import numpy as np
import jax
import jax.numpy as jnp
from jax.experimental import pallas as pl
from jax.experimental.pallas import tpu as pltpu


# -----------------------------------------------------------------------------
# generation-aware VMEM budget (review: don't hard-code 48 MiB everywhere)
# -----------------------------------------------------------------------------
def _vmem_limit_bytes():
    try:
        cap = int(pltpu.get_tpu_info().vmem_capacity_bytes)
    except Exception:
        cap = 64 * 1024 * 1024                      # conservative fallback (v7x-sized)
    # 3/4 of physical VMEM: 48 MiB on v7x (64 MiB/TC), 96 MiB on v5e/v6e (128 MiB)
    return max(32 * 1024 * 1024, min(cap * 3 // 4, 112 * 1024 * 1024))


# -----------------------------------------------------------------------------
# ConvTranspose3d(in, out, kernel_size=3, stride=scale_factor, padding=1)
# -----------------------------------------------------------------------------
def _tap_offsets(s):
    # un-dilated input offsets that can contribute to an output voxel (per dim)
    return (-1, 0, 1) if s == 1 else (0, 1)


def _tap_table(s, offs, k=3):
    """(phase, offset-slot) -> flipped-kernel tap index, for one spatial dim."""
    tab = {}
    for p in range(s):
        for kd in range(k):
            if (p + kd - 1) % s == 0:
                tab[(p, offs.index((p + kd - 1) // s))] = kd
    return tab


def _make_upconv_kernel(t_d, t_h, t_w, Hi, Wi, Cin, rt):
    n_row_tiles = Hi // rt

    def kernel(*refs):
        x_refs = refs[:t_d]                          # t_d shifted depth planes (bf16)
        w_ref, b_ref, o_ref = refs[t_d], refs[t_d + 1], refs[t_d + 2]
        w = w_ref[...]                               # (n_taps*Cin, PC)
        b = b_ref[...]                               # (1, PC) fp32
        # H tiled inside the kernel: one folded matmul per row tile keeps the
        # fp32 accumulator small and the MXU contraction deep (K = n_taps*Cin).
        for r in range(n_row_tiles):
            r0 = r * rt
            taps = []
            for oi_d in range(t_d):
                for oi_h in range(t_h):
                    for oi_w in range(t_w):
                        sl = x_refs[oi_d][0, 0,
                                          r0 + oi_h:r0 + oi_h + rt,
                                          oi_w:oi_w + Wi, :]
                        taps.append(sl.reshape(rt * Wi, Cin))
            lhs = jnp.concatenate(taps, axis=-1)     # (rt*Wi, n_taps*Cin)
            acc = jnp.dot(lhs, w, preferred_element_type=jnp.float32) + b
            o_ref[0, 0, r0 * Wi:(r0 + rt) * Wi, :] = acc.astype(o_ref.dtype)

    return kernel


def conv_transpose3d_pallas(x, weight, bias, stride, padding, output_size,
                            compute_dtype=jnp.bfloat16):
    """x: (N, Cin, D, H, W); weight: (Cin, Cout, 3, 3, 3) [PyTorch layout]; bias: (Cout,).

    compute_dtype=jnp.float32 is available if bit-closeness to the fp32
    PyTorch reference matters (bf16 gives ~1e-2 relative error).
    """
    N, Cin, Di, Hi, Wi = x.shape
    Cout = weight.shape[1]
    k = 3
    if tuple(weight.shape[2:]) != (k, k, k) or padding != 1:
        raise NotImplementedError("only kernel_size=3, padding=1 is supported")
    stride = tuple(int(s) for s in stride)
    sd, sh, sw = stride
    Do, Ho, Wo = output_size
    for isz, osz, st in zip((Di, Hi, Wi), output_size, stride):
        op = osz - ((isz - 1) * st - 2 * padding + k)
        if not (0 <= op < st):
            raise ValueError(f"requested output size {osz} not reachable from input {isz}")

    offs_d, offs_h, offs_w = _tap_offsets(sd), _tap_offsets(sh), _tap_offsets(sw)
    t_d, t_h, t_w = len(offs_d), len(offs_h), len(offs_w)
    n_taps = t_d * t_h * t_w
    P = sd * sh * sw                                  # output phases per input voxel
    PC = P * Cout                                     # lane width of the output tile

    # Effective phase weights, folded over taps: (n_taps*Cin, P*Cout).  Row
    # order is (tap-major, ci-minor) to match the in-kernel concatenation.
    wf = weight[:, :, ::-1, ::-1, ::-1]               # transposed conv == correlation w/ flipped kernel
    W = jnp.zeros((t_d, t_h, t_w, Cin, sd, sh, sw, Cout), weight.dtype)
    tab_d, tab_h, tab_w = (_tap_table(sd, offs_d), _tap_table(sh, offs_h),
                           _tap_table(sw, offs_w))
    for (pd, oid), kd in tab_d.items():
        for (ph, oih), kh in tab_h.items():
            for (pw, oiw), kw in tab_w.items():
                W = W.at[oid, oih, oiw, :, pd, ph, pw, :].set(wf[:, :, kd, kh, kw])
    w_eff = W.reshape(n_taps * Cin, PC).astype(compute_dtype)
    b_eff = jnp.tile(bias.astype(jnp.float32), P).reshape(1, PC)

    # channels-last input, zero-padded so every tap slice is a plain static window
    # TODO(synk): the transpose+pad+cast materialises one extra (pre-upsample,
    # 1/scale^3-sized) copy of the input; fusing it into the kernel would need
    # in-kernel boundary masking.
    xcl = jnp.transpose(x, (0, 2, 3, 4, 1)).astype(compute_dtype)   # (N, D, H, W, Cin)
    lod, loh, low = int(sd == 1), int(sh == 1), int(sw == 1)
    xp = jnp.pad(xcl, ((0, 0), (lod, 1), (loh, 1), (low, 1), (0, 0)))
    Hp, Wp = xp.shape[2], xp.shape[3]

    # row tile: largest divisor of Hi keeping the matmul M dim (rt*Wi) moderate
    rt = 1
    for cand in range(Hi, 0, -1):
        if Hi % cand == 0 and cand * Wi <= 1024:
            rt = cand
            break

    # one grid step = one (sample, input depth plane); the same HBM array is
    # passed t_d times with depth-shifted index_maps (block size 1 along D).
    in_specs = [pl.BlockSpec((1, 1, Hp, Wp, Cin),
                             (lambda n, d, oi=oi: (n, d + oi, 0, 0, 0)))
                for oi in range(t_d)]
    in_specs += [pl.BlockSpec((n_taps * Cin, PC), lambda n, d: (0, 0)),
                 pl.BlockSpec((1, PC), lambda n, d: (0, 0))]

    out_pb = pl.pallas_call(
        _make_upconv_kernel(t_d, t_h, t_w, Hi, Wi, Cin, rt),
        out_shape=jax.ShapeDtypeStruct((N, Di, Hi * Wi, PC), x.dtype),
        grid=(N, Di),
        in_specs=in_specs,
        out_specs=pl.BlockSpec((1, 1, Hi * Wi, PC), lambda n, d: (n, d, 0, 0)),
        compiler_params=pltpu.CompilerParams(
            dimension_semantics=("parallel", "parallel"),
            vmem_limit_bytes=_vmem_limit_bytes()),
    )(*([xp] * t_d), w_eff, b_eff)

    # TODO(synk): this single fused XLA transpose (phase de-interleave + NCDHW)
    # is one extra HBM read+write of the upsampled tensor; writing NCDHW
    # directly from the kernel needs strided/cross-layout stores in Mosaic.
    out = out_pb.reshape(N, Di, Hi, Wi, sd, sh, sw, Cout)
    out = jnp.transpose(out, (0, 7, 1, 4, 2, 5, 3, 6))
    out = out.reshape(N, Cout, Di * sd, Hi * sh, Wi * sw)
    return out[:, :, :Do, :Ho, :Wo]


# -----------------------------------------------------------------------------
# F.interpolate(x, size=output_size, mode='nearest') for 5D inputs
# -----------------------------------------------------------------------------
def _nearest_src_indices(out_size, in_size):
    # PyTorch 'nearest': src = floor(dst * in_size / out_size), clamped
    idx = np.floor(np.arange(out_size) * (float(in_size) / float(out_size)))
    return np.minimum(idx.astype(np.int64), in_size - 1).astype(np.int32)


def _make_nearest_kernel(use_combined, C, Hi, Wi, Ho, Wo, rep):
    def kernel(didx_ref, x_ref, *refs):
        del didx_ref                                  # consumed by the BlockSpec index_maps
        o_ref = refs[-1]
        x3 = x_ref[0, :, 0]                           # (C, Hi, Wi)
        if use_combined:
            # single combined H/W one-hot selection matmul -> lane-dense (C, Ho*Wo)
            s_ref = refs[0]
            z = jnp.dot(x3.reshape(C, Hi * Wi), s_ref[...],
                        preferred_element_type=jnp.float32)
            z = z.reshape(C, 1, Ho, Wo)
        else:
            # large-plane fallback: W gather as one folded matmul, H gather as
            # a batched one-hot einsum.
            # TODO(synk): fold the H selection into one big matmul too (avoids
            # replicating SH per channel / C small MXU calls).
            swt_ref, sh_ref = refs[0], refs[1]
            yw = jnp.dot(x3.reshape(C * Hi, Wi), swt_ref[...],
                         preferred_element_type=jnp.float32)        # (C*Hi, Wo)
            y3 = yw.reshape(C, Hi, Wo)
            sh_b = jnp.broadcast_to(sh_ref[...], (C, Ho, Hi))
            z = jnp.einsum('coh,chw->cow', sh_b, y3,
                           preferred_element_type=jnp.float32)       # (C, Ho, Wo)
            z = z.reshape(C, 1, Ho, Wo)
        # write all `rep` duplicated output depth slices from this one fetch
        o_ref[0] = jnp.broadcast_to(z, (C, rep, Ho, Wo)).astype(o_ref.dtype)

    return kernel


def nearest_interpolate3d_pallas(x, output_size):
    """x: (N, C, D, H, W) -> (N, C, *output_size), mode='nearest' (NCDHW in and out)."""
    N, C, Di, Hi, Wi = x.shape
    Do, Ho, Wo = output_size
    d_idx = jnp.asarray(_nearest_src_indices(Do, Di), jnp.int32)
    h_idx = _nearest_src_indices(Ho, Hi)
    w_idx = _nearest_src_indices(Wo, Wi)

    # integer depth upscale -> each source depth slice feeds `rep` output slices
    rep = Do // Di if (Do % Di == 0) else 1

    combined_bytes = Hi * Wi * Ho * Wo * 4
    use_combined = combined_bytes <= 8 * 1024 * 1024

    if use_combined:
        S = np.zeros((Hi * Wi, Ho * Wo), np.float32)
        src = (h_idx[:, None] * Wi + w_idx[None, :]).reshape(-1)
        S[src, np.arange(Ho * Wo)] = 1.0
        operands = (jnp.asarray(S),)
        op_specs = [pl.BlockSpec((Hi * Wi, Ho * Wo), lambda n, db, didx: (0, 0))]
    else:
        SWT = np.zeros((Wi, Wo), np.float32)
        SWT[w_idx, np.arange(Wo)] = 1.0
        SH = np.zeros((Ho, Hi), np.float32)
        SH[np.arange(Ho), h_idx] = 1.0
        operands = (jnp.asarray(SWT), jnp.asarray(SH))
        op_specs = [pl.BlockSpec((Wi, Wo), lambda n, db, didx: (0, 0)),
                    pl.BlockSpec((Ho, Hi), lambda n, db, didx: (0, 0))]

    # NCDHW tiled directly (no wrapper transposes); the D gather / dedup is
    # done by the DMA via the scalar-prefetch index_map over *source* slices.
    in_specs = [pl.BlockSpec((1, C, 1, Hi, Wi),
                             lambda n, db, didx: (n, 0, didx[db * rep], 0, 0))]
    in_specs += op_specs

    out = pl.pallas_call(
        _make_nearest_kernel(use_combined, C, Hi, Wi, Ho, Wo, rep),
        out_shape=jax.ShapeDtypeStruct((N, C, Do, Ho, Wo), x.dtype),
        grid_spec=pltpu.PrefetchScalarGridSpec(
            num_scalar_prefetch=1,
            grid=(N, Do // rep),
            in_specs=in_specs,
            out_specs=pl.BlockSpec((1, C, rep, Ho, Wo),
                                   lambda n, db, didx: (n, 0, db, 0, 0)),
        ),
        compiler_params=pltpu.CompilerParams(
            dimension_semantics=("parallel", "parallel"),   # disjoint output blocks
            vmem_limit_bytes=_vmem_limit_bytes()),
    )(d_idx, x, *operands)
    return out


# -----------------------------------------------------------------------------
# Module port
# -----------------------------------------------------------------------------
class Upsampling:
    """Pallas port of model_/residual_unet_att.Upsampling."""

    def __init__(self, transposed_conv, in_channels=None, out_channels=None,
                 scale_factor=(2, 2, 2), mode='nearest', *, key=None):
        if isinstance(scale_factor, int):
            scale_factor = (scale_factor,) * 3
        self.scale_factor = tuple(int(s) for s in scale_factor)
        self.transposed_conv = transposed_conv
        self.mode = mode
        if transposed_conv:
            if key is None:
                key = jax.random.PRNGKey(0)
            kw, kb = jax.random.split(key)
            # PyTorch ConvTranspose3d weight layout: (in_channels, out_channels, 3, 3, 3)
            bound = 1.0 / math.sqrt(in_channels * 27)
            self.weight = jax.random.uniform(kw, (in_channels, out_channels, 3, 3, 3),
                                             jnp.float32, -bound, bound)
            self.bias = jax.random.uniform(kb, (out_channels,), jnp.float32, -bound, bound)
            self.upsample = partial(conv_transpose3d_pallas, weight=self.weight,
                                    bias=self.bias, stride=self.scale_factor, padding=1)
        else:
            if mode != 'nearest':
                # TODO(synk): only mode='nearest' interpolation is implemented in Pallas.
                raise NotImplementedError("only mode='nearest' is supported")
            self.upsample = nearest_interpolate3d_pallas

    def __call__(self, encoder_features, x):
        output_size = tuple(encoder_features.shape[2:])
        return self.upsample(x, output_size=output_size)


if __name__ == "__main__":
    key = jax.random.PRNGKey(0)
    kx, kenc, kparam = jax.random.split(key, 3)

    # Cin=Cout=16 so K = n_taps*Cin = 128 and PC = P*Cout = 128 (lane-dense)
    N, Cin, Cout = 2, 16, 16
    x = jax.random.normal(kx, (N, Cin, 4, 8, 8), jnp.float32)               # low-res features
    encoder_features = jax.random.normal(kenc, (N, Cout, 8, 16, 16), jnp.float32)

    # --- transposed-conv branch ----------------------------------------------
    up_tc = Upsampling(True, in_channels=Cin, out_channels=Cout,
                       scale_factor=(2, 2, 2), key=kparam)
    y_tc = jax.block_until_ready(up_tc(encoder_features, x))
    assert y_tc.shape == (N, Cout, 8, 16, 16)

    # reference: ConvTranspose3d == dilated conv with flipped kernel
    op = [o - ((i - 1) * s - 2 * 1 + 3)
          for i, o, s in zip(x.shape[2:], encoder_features.shape[2:], (2, 2, 2))]
    rhs = jnp.transpose(up_tc.weight[:, :, ::-1, ::-1, ::-1], (1, 0, 2, 3, 4))
    ref_tc = jax.lax.conv_general_dilated(
        x, rhs, window_strides=(1, 1, 1),
        padding=[(1, 1 + op[0]), (1, 1 + op[1]), (1, 1 + op[2])],
        lhs_dilation=(2, 2, 2),
        dimension_numbers=('NCDHW', 'OIDHW', 'NCDHW'),
    ) + up_tc.bias.reshape(1, Cout, 1, 1, 1)
    assert jnp.allclose(y_tc, ref_tc, rtol=5e-2, atol=5e-2)

    # --- nearest-interpolation branch ----------------------------------------
    up_nn = Upsampling(False, mode='nearest')
    y_nn = jax.block_until_ready(up_nn(encoder_features, x))
    assert y_nn.shape == (N, Cin, 8, 16, 16)

    d_idx = _nearest_src_indices(8, 4)
    h_idx = _nearest_src_indices(16, 8)
    w_idx = _nearest_src_indices(16, 8)
    ref_nn = jnp.take(jnp.take(jnp.take(x, d_idx, axis=2), h_idx, axis=3), w_idx, axis=4)
    assert jnp.allclose(y_nn, ref_nn, rtol=2e-2, atol=2e-2)

    print("KERNEL_OK")
</pallas_src>

<mosaic_0001>
module attributes {stable_mosaic.version = 11 : i64} {
  func.func @kernel(%arg0: i32, %arg1: i32, %arg2: memref<1x1x9x9x16xbf16, #tpu.memory_space<vmem>>, %arg3: memref<1x1x9x9x16xbf16, #tpu.memory_space<vmem>>, %arg4: memref<128x128xbf16, #tpu.memory_space<vmem>>, %arg5: memref<1x128xf32, #tpu.memory_space<vmem>>, %arg6: memref<1x1x64x128xf32, #tpu.memory_space<vmem>>) attributes {dimension_semantics = [#tpu.dimension_semantics<parallel>, #tpu.dimension_semantics<parallel>], iteration_bounds = array<i64: 2, 4>, scalar_prefetch = 0 : i64, scratch_operands = 0 : i64, tpu.core_type = #tpu.core_type<tc>, window_params = [{transform_indices = @transform_0, window_bounds = array<i64: 1, 1, 9, 9, 16>}, {transform_indices = @transform_1, window_bounds = array<i64: 1, 1, 9, 9, 16>}, {pipeline_mode = #tpu.pipeline_mode<synchronous>, transform_indices = @transform_2, window_bounds = array<i64: 128, 128>}, {pipeline_mode = #tpu.pipeline_mode<synchronous>, transform_indices = @transform_3, window_bounds = array<i64: 1, 128>}, {transform_indices = @transform_4, window_bounds = array<i64: 1, 1, 64, 128>}]} {
    %c0 = arith.constant 0 : index
    %c0_0 = arith.constant 0 : index
    %0 = vector.load %arg4[%c0, %c0_0] : memref<128x128xbf16, #tpu.memory_space<vmem>>, vector<128x128xbf16>
    %c0_1 = arith.constant 0 : index
    %c0_2 = arith.constant 0 : index
    %1 = vector.load %arg5[%c0_1, %c0_2] : memref<1x128xf32, #tpu.memory_space<vmem>>, vector<1x128xf32>
    %c0_3 = arith.constant 0 : index
    %c0_4 = arith.constant 0 : index
    %c0_5 = arith.constant 0 : index
    %c0_6 = arith.constant 0 : index
    %c0_7 = arith.constant 0 : index
    %2 = vector.load %arg2[%c0_3, %c0_4, %c0_5, %c0_6, %c0_7] : memref<1x1x9x9x16xbf16, #tpu.memory_space<vmem>>, vector<1x1x8x8x16xbf16>
    %3 = vector.shape_cast %2 : vector<1x1x8x8x16xbf16> to vector<8x8x16xbf16>
    %4 = vector.shape_cast %3 : vector<8x8x16xbf16> to vector<64x16xbf16>
    %c0_8 = arith.constant 0 : index
    %c0_9 = arith.constant 0 : index
    %c0_10 = arith.constant 0 : index
    %c1 = arith.constant 1 : index
    %c0_11 = arith.constant 0 : index
    %5 = vector.load %arg2[%c0_8, %c0_9, %c0_10, %c1, %c0_11] : memref<1x1x9x9x16xbf16, #tpu.memory_space<vmem>>, vector<1x1x8x8x16xbf16>
    %6 = vector.shape_cast %5 : vector<1x1x8x8x16xbf16> to vector<8x8x16xbf16>
    %7 = vector.shape_cast %6 : vector<8x8x16xbf16> to vector<64x16xbf16>
    %c0_12 = arith.constant 0 : index
    %c0_13 = arith.constant 0 : index
    %c1_14 = arith.constant 1 : index
    %c0_15 = arith.constant 0 : index
    %c0_16 = arith.constant 0 : index
    %8 = vector.load %arg2[%c0_12, %c0_13, %c1_14, %c0_15, %c0_16] : memref<1x1x9x9x16xbf16, #tpu.memory_space<vmem>>, vector<1x1x8x8x16xbf16>
    %9 = vector.shape_cast %8 : vector<1x1x8x8x16xbf16> to vector<8x8x16xbf16>
    %10 = vector.shape_cast %9 : vector<8x8x16xbf16> to vector<64x16xbf16>
    %c0_17 = arith.constant 0 : index
    %c0_18 = arith.constant 0 : index
    %c1_19 = arith.constant 1 : index
    %c1_20 = arith.constant 1 : index
    %c0_21 = arith.constant 0 : index
    %11 = vector.load %arg2[%c0_17, %c0_18, %c1_19, %c1_20, %c0_21] : memref<1x1x9x9x16xbf16, #tpu.memory_space<vmem>>, vector<1x1x8x8x16xbf16>
    %12 = vector.shape_cast %11 : vector<1x1x8x8x16xbf16> to vector<8x8x16xbf16>
    %13 = vector.shape_cast %12 : vector<8x8x16xbf16> to vector<64x16xbf16>
    %c0_22 = arith.constant 0 : index
    %c0_23 = arith.constant 0 : index
    %c0_24 = arith.constant 0 : index
    %c0_25 = arith.constant 0 : index
    %c0_26 = arith.constant 0 : index
    %14 = vector.load %arg3[%c0_22, %c0_23, %c0_24, %c0_25, %c0_26] : memref<1x1x9x9x16xbf16, #tpu.memory_space<vmem>>, vector<1x1x8x8x16xbf16>
    %15 = vector.shape_cast %14 : vector<1x1x8x8x16xbf16> to vector<8x8x16xbf16>
    %16 = vector.shape_cast %15 : vector<8x8x16xbf16> to vector<64x16xbf16>
    %c0_27 = arith.constant 0 : index
    %c0_28 = arith.constant 0 : index
    %c0_29 = arith.constant 0 : index
    %c1_30 = arith.constant 1 : index
    %c0_31 = arith.constant 0 : index
    %17 = vector.load %arg3[%c0_27, %c0_28, %c0_29, %c1_30, %c0_31] : memref<1x1x9x9x16xbf16, #tpu.memory_space<vmem>>, vector<1x1x8x8x16xbf16>
    %18 = vector.shape_cast %17 : vector<1x1x8x8x16xbf16> to vector<8x8x16xbf16>
    %19 = vector.shape_cast %18 : vector<8x8x16xbf16> to vector<64x16xbf16>
    %c0_32 = arith.constant 0 : index
    %c0_33 = arith.constant 0 : index
    %c1_34 = arith.constant 1 : index
    %c0_35 = arith.constant 0 : index
    %c0_36 = arith.constant 0 : index
    %20 = vector.load %arg3[%c0_32, %c0_33, %c1_34, %c0_35, %c0_36] : memref<1x1x9x9x16xbf16, #tpu.memory_space<vmem>>, vector<1x1x8x8x16xbf16>
    %21 = vector.shape_cast %20 : vector<1x1x8x8x16xbf16> to vector<8x8x16xbf16>
    %22 = vector.shape_cast %21 : vector<8x8x16xbf16> to vector<64x16xbf16>
    %c0_37 = arith.constant 0 : index
    %c0_38 = arith.constant 0 : index
    %c1_39 = arith.constant 1 : index
    %c1_40 = arith.constant 1 : index
    %c0_41 = arith.constant 0 : index
    %23 = vector.load %arg3[%c0_37, %c0_38, %c1_39, %c1_40, %c0_41] : memref<1x1x9x9x16xbf16, #tpu.memory_space<vmem>>, vector<1x1x8x8x16xbf16>
    %24 = vector.shape_cast %23 : vector<1x1x8x8x16xbf16> to vector<8x8x16xbf16>
    %25 = vector.shape_cast %24 : vector<8x8x16xbf16> to vector<64x16xbf16>
    %26 = tpu.concatenate %4, %7, %10, %13, %16, %19, %22, %25 in 1 : vector<64x16xbf16>, vector<64x16xbf16>, vector<64x16xbf16>, vector<64x16xbf16>, vector<64x16xbf16>, vector<64x16xbf16>, vector<64x16xbf16>, vector<64x16xbf16> -> vector<64x128xbf16>
    %cst = arith.constant dense<0.000000e+00> : vector<64x128xf32>
    %27 = tpu.matmul %26, %0, %cst {dimension_numbers = #tpu.dot_dimension_numbers<[1], [0], [0], [1], [0, 0, 1, 1], [], []>} : vector<64x128xbf16>, vector<128x128xbf16>, vector<64x128xf32> -> vector<64x128xf32>
    %28 = vector.broadcast %1 : vector<1x128xf32> to vector<64x128xf32>
    %29 = arith.addf %27, %28 : vector<64x128xf32>
    %c0_42 = arith.constant 0 : index
    %c0_43 = arith.constant 0 : index
    %c0_44 = arith.constant 0 : index
    %c0_45 = arith.constant 0 : index
    %30 = vector.load %arg6[%c0_42, %c0_43, %c0_44, %c0_45] : memref<1x1x64x128xf32, #tpu.memory_space<vmem>>, vector<1x1x64x128xf32>
    %31 = vector.shape_cast %30 : vector<1x1x64x128xf32> to vector<64x128xf32>
    %32 = vector.shape_cast %29 : vector<64x128xf32> to vector<1x1x64x128xf32>
    tpu.vector_store %arg6[%c0_42, %c0_43, %c0_44, %c0_45], %32 {strides = array<i32>} : memref<1x1x64x128xf32, #tpu.memory_space<vmem>>, vector<1x1x64x128xf32>,
    return
  }
  func.func @transform_0(%arg0: i32, %arg1: i32) -> (i32, i32, i32, i32, i32) {
    %c0_i32 = arith.constant 0 : i32
    %0 = arith.addi %arg1, %c0_i32 : i32
    %c0_i32_0 = arith.constant 0 : i32
    %c0_i32_1 = arith.constant 0 : i32
    %c0_i32_2 = arith.constant 0 : i32
    %c0_i32_3 = arith.constant 0 : i32
    return %arg0, %0, %c0_i32_0, %c0_i32_1, %c0_i32_2 : i32, i32, i32, i32, i32
  }
  func.func @transform_1(%arg0: i32, %arg1: i32) -> (i32, i32, i32, i32, i32) {
    %c1_i32 = arith.constant 1 : i32
    %0 = arith.addi %arg1, %c1_i32 : i32
    %c0_i32 = arith.constant 0 : i32
    %c0_i32_0 = arith.constant 0 : i32
    %c0_i32_1 = arith.constant 0 : i32
    %c0_i32_2 = arith.constant 0 : i32
    return %arg0, %0, %c0_i32, %c0_i32_0, %c0_i32_1 : i32, i32, i32, i32, i32
  }
  func.func @transform_2(%arg0: i32, %arg1: i32) -> (i32, i32) {
    %c0_i32 = arith.constant 0 : i32
    %c0_i32_0 = arith.constant 0 : i32
    %c0_i32_1 = arith.constant 0 : i32
    return %c0_i32, %c0_i32_0 : i32, i32
  }
  func.func @transform_3(%arg0: i32, %arg1: i32) -> (i32, i32) {
    %c0_i32 = arith.constant 0 : i32
    %c0_i32_0 = arith.constant 0 : i32
    %c0_i32_1 = arith.constant 0 : i32
    return %c0_i32, %c0_i32_0 : i32, i32
  }
  func.func @transform_4(%arg0: i32, %arg1: i32) -> (i32, i32, i32, i32) {
    %c0_i32 = arith.constant 0 : i32
    %c0_i32_0 = arith.constant 0 : i32
    %c0_i32_1 = arith.constant 0 : i32
    return %arg0, %arg1, %c0_i32, %c0_i32_0 : i32, i32, i32, i32
  }
}

</mosaic_0001>

<bundles_post_ra>
// kernel: tpu_custom_call.1
= control target key start
LH: loop header
LB: loop body
LE: loop exit
PB: predicated region body
PF: predicated region fallthrough
CT: control target
= control target key end

     0   :  { %9 = vsyncpa [#allocation3], 0  ;;  %s2192_s0 = inlined_call_operand.vmem [shape: bf16[2,5,9,9,16], index: 0, kind: input, shape index: {}]   ;;  %s2193_s1 = inlined_call_operand.vmem [shape: bf16[2,5,9,9,16], index: 1, kind: input, shape index: {}]   ;;  %s2194_s2 = inlined_call_operand.vmem [shape: bf16[128,128], index: 2, kind: input, shape index: {}]   ;;  %s2195_s3 = inlined_call_operand.vmem [shape: f32[1,128], index: 3, kind: input, shape index: {}]   ;;  %s2196_s4 = inlined_call_operand.hbm [shape: f32[2,4,64,128], index: 4, kind: output, shape index: {}]  }
   0x1   :  { %11 = vsyncpa [#allocation3 + $0x1], 0  ;;  %s1679_s15 = smov 0   ;;  %s1681_s16 = smov 0  }
   0x2   :  { %s1683_s17 = smov 0   ;;  %s1685_s18 = smov 0  }
   0x3   :  { %s1687_s19 = smov 0   ;;  %s1689_s20 = smov 0  }
   0x4   :  { %s1691_s21 = smov 0   ;;  %s1693_s22 = smov 0  }
   0x5 LB: > { %s1304_s23 = sadd.s32 4294967295, %s1642_s22   ;;  %s1305_s24 = sadd.s32 4294967294, %s1642_s22   ;;  %s1642_s22 = sphi %s1693_s22, %s17_s22   ;;  %s1638_s21 = sphi %s1691_s21, %s2208_s21   ;;  %s1634_s20 = sphi %s1689_s20, %s2207_s20   ;;  %s1630_s19 = sphi %s1687_s19, %s2206_s19   ;;  %s1626_s18 = sphi %s1685_s18, %s2205_s18   ;;  %s1622_s17 = sphi %s1683_s17, %s2204_s17   ;;  %s1618_s16 = sphi %s1681_s16, %s2203_s16   ;;  %s1614_s15 = sphi %s1679_s15, %s2202_s15  }
   0x6   : > { %s26_s25 = sadd.s32 1, %s1634_s20  ;;  %s29_s26 = sadd.s32 1, %s1638_s21 }
   0x7   : > { %p27_p0 = scmp.ge.s32.totalorder %s26_s25, 4  ;;  %p148_p1 = scmp.ne.s32.totalorder %s1622_s17, %s1618_s16 }
   0x8   : > { %p149_p2 = scmp.eq.s32.totalorder %s1304_s23, 7  ;;  %p154_p5 = scmp.ne.s32.totalorder %s1618_s16, %s1614_s15 }
   0x9   : > { %s2210_s25 = smov (%p27_p0, %s26_s25), 0  ;;  %s2212_s26 = smov (!%p27_p0, %s29_s26), %s1638_s21 }
   0xa   : > { %s134_s27 = ssub.s32 %s1634_s20, %s2210_s25  ;;  %p1730_p3 = por %p149_p2, %p148_p1 }
   0xb   : > { %p31_p4 = scmp.ge.s32.totalorder %s2212_s26, 2  ;;  %p155_p6 = scmp.eq.s32.totalorder %s1305_s24, 7 }
   0xc   : > { %p1308_p7 = scmp.ge.s32.totalorder %s1642_s22, 1  ;;  %p205_p9 = scmp.lt.s32.totalorder %s1642_s22, 9 }
   0xd   : > { %s2214_s26 = smov (%p31_p4, %s2212_s26), 0  ;;  %p1739_p8 = por %p155_p6, %p154_p5 }
   0xe   : > { %s133_s30 = ssub.s32 %s1638_s21, %s2214_s26  ;;  %s138_s5 = sadd.s32 1, %s1622_s17 }
   0xf   : > { %s135_s6 = sor.u32 %s134_s27, %s133_s30  ;;  %p206_p10 = pnand %p1308_p7, %p205_p9 }
  0x10   : > { %p136_p11 = scmp.eq.s32.totalorder %s135_s6, 0  ;;  %p245_p12 = scmp.lt.s32.totalorder (!%p206_p10), %s1630_s19, 1 }
  0x11   : > { %209 = sbr.rel (%p206_p10) target bundleno = 445 (0x1bd), region = 36  ;;  %p247_p13 = scmp.lt.s32.totalorder (!%p206_p10), %s1626_s18, 4 }
  0x12   : > { %s1748_s7 = scalar_select %p136_p11, %s1622_s17, %s138_s5  }
  0x13   : > { %s1644_s27 = smov (!%p206_p10), 32   ;;  %s254_s30 = sadd.s32 (!%p206_p10), 1, %s1626_s18 }
  0x14   : > { %p1801_p0 = scmp.lt.s32.totalorder (!%p206_p10), %s254_s30, 4  ;;  %s1386_s14 = sshll.u32 (!%p206_p10), %s1626_s18, 3 }
  0x15   : > { %s1387_s23 = sshll.u32 (!%p206_p10), %s1630_s19, 5 }
  0x16   : > { %s1753_s8 = scalar_select %p245_p12, %s1630_s19, 1  ;;  %vm299_vm0 = vsmask.f32 3328  ;;  %vm300_vm1 = vsmask.f32 7440  ;;  %vm984_vm3 = vcmask 130048  }
  0x17   : > { %s248_s9 = scalar_select %p247_p13, %s1626_s18, 4  ;;  %vm1834_vm2 = vmor %vm299_vm0, %vm300_vm1  ;;  %vm1006_vm4 = vcmask 392192   ;;  %vm997_vm5 = vcmask 261120   ;;  %vm1015_vm6 = vcmask 523264   ;;  %vm1024_vm7 = vcmask 654336  }
  0x18   : > { %s1444_s10 = smul.u32 90, %s1753_s8  ;;  %s2216_s30 = smov (!%p1801_p0, %s254_s30), 4  ;;  %vm1033_vm8 = vcmask 785408   ;;  %vm1042_vm9 = vcmask 916480  }
  0x19   : > { %s1443_s11 = smul.u32 18, %s248_s9  ;;  %s1645_s9 = smov 16  }
  0x1a   : > { %s1445_s6 = smul.u32 18, %s2216_s30 }
  0x1b   : > { %s251_s12 = sadd.s32 %s1444_s10, %s1443_s11 }
  0x1c   : > { %s1310_s13 = sshll.u32 %s251_s12, 2  ;;  %s1881_s11 = sadd.s32 %s1445_s6, %s1444_s10 }
  0x1d   : > { %s1762_s24 = scalar_lea.vmem %s2192_s0, %s1310_s13  ;;  %s1311_s8 = sshll.u32 %s1881_s11, 2 }
  0x1e   : > { %v1316_v0 = vld [vmem:[%s1762_s24 + $0x28] sm:$0xf]  ;;  %v1317_v1 = vld [vmem:[%s1762_s24 + $0x30] sm:$0xf]  ;;  %v1318_v20 = vld [vmem:[%s1762_s24 + $0x38] sm:$0xf]  ;;  %s1908_s13 = scalar_lea.vmem %s2193_s1, %s1311_s8 }
  0x1f   : > { %v1312_v2 = vld [vmem:[%s1762_s24 + $0x8] sm:$0xf]  ;;  %v502_v3 = vshrl.u32 %v1317_v1, 16  ;;  %v505_v4 = vshll.u32 %v1317_v1, 16  ;;  %v1354_v5 = vcombine.low %v1316_v0, %v1317_v1  ;;  %v488_v6 = vshrl.u32 %v1316_v0, 16  ;;  %s1647_s8 = smov 64  }
  0x20   : > { %v1313_v7 = vld [vmem:[%s1762_s24 + $0x10] sm:$0xf]  ;;  %v491_v8 = vshll.u32 %v1316_v0, 16  ;;  %v432_v15 = vshrl.u32 %v1312_v2, 16  ;;  %v435_v19 = vshll.u32 %v1312_v2, 16  ;;  %v516_v24 = vshrl.u32 %v1318_v20, 16 }
  0x21   : > { %v446_v9 = vshrl.u32 %v1313_v7, 16  ;;  %v449_v10 = vshll.u32 %v1313_v7, 16  ;;  %v1352_v11 = vcombine.low %v1312_v2, %v1313_v7  ;;  %v504_v12 = vrot.slane %v502_v3, 4  ;;  %864 = vrot.lane.b32.xlu1 %v1354_v5, %s1644_s27  ;;  %v1319_v23 = vld [vmem:[%s1762_s24 + $0x40] sm:$0xf]  ;;  %s1650_s11 = smov 112  }
  0x22   : > { %v507_v13 = vrot.slane %v505_v4, 5  ;;  %v490_v14 = vrot.slane %v488_v6, 4  ;;  %v493_v16 = vrot.slane %v491_v8, 5  ;;  %v434_v22 = vrot.slane %v432_v15, 4  ;;  %v1314_v30 = vld [vmem:[%s1762_s24 + $0x18] sm:$0xf] }
  0x23   : > { %v448_v17 = vrot.slane %v446_v9, 4  ;;  %v451_v18 = vrot.slane %v449_v10, 5  ;;  %860 = vrot.lane.b32.xlu0 %v1352_v11, %s1644_s27  ;;  %v519_v25 = vshll.u32 %v1318_v20, 16  ;;  %v437_v28 = vrot.slane %v435_v19, 5  ;;  %v1315_v31 = vld [vmem:[%s1762_s24 + $0x20] sm:$0xf] }
  0x24   : > { %v508_v21 = vor.u32 %v507_v13, %v504_v12  ;;  %v494_v26 = vor.u32 %v493_v16, %v490_v14  ;;  %v530_v29 = vshrl.u32 %v1319_v23, 16  ;;  %v1777_v33 = vrot.slane %v516_v24, 4  ;;  %v1782_v36 = vld [vmem:[%s1762_s24 + $0x10] sm:$0xf]  ;;  %v1791_v41 = vld [vmem:[%s1762_s24 + $0x18] sm:$0xf] }
  0x25   : > { %v452_v27 = vor.u32 %v451_v18, %v448_v17  ;;  %v1779_v34 = vrot.slane %v519_v25, 5  ;;  %v533_v35 = vshll.u32 %v1319_v23, 16  ;;  %v438_v39 = vor.u32 %v437_v28, %v434_v22  ;;  %v293_v46 = vld [vmem:[%s1762_s24 + $0x14] sm:$0x1]  ;;  %v294_v51 = vld [vmem:[%s1762_s24 + $0x1c] sm:$0x1] }
  0x26   : > { %v1775_v32 = vrot.slane %v508_v21, 4  ;;  %v1784_v37 = vrot.slane %v494_v26, 4  ;;  %v1788_v40 = vrot.slane %v530_v29, 4  ;;  %v1355_v43 = vcombine.low %v1318_v20, %v1319_v23  ;;  %v1813_v56 = vld [vmem:[%s1762_s24] sm:$0xf] }
  0x27   : > { %v1786_v38 = vrot.slane %v452_v27, 4  ;;  %v1793_v42 = vrot.slane %v533_v35, 5  ;;  %v460_v44 = vshrl.u32 %v1314_v30, 16  ;;  %v463_v45 = vshll.u32 %v1314_v30, 16  ;;  %v291_v61 = vld [vmem:[%s1762_s24 + $0x4] sm:$0x1] }
  0x28   : > { %v1796_v47 = vrot.slane %v438_v39, 4  ;;  %v474_v48 = vshrl.u32 %v1315_v31, 16  ;;  %v477_v49 = vshll.u32 %v1315_v31, 16  ;;  %v1353_v50 = vcombine.low %v1314_v30, %v1315_v31  ;;  %866 = vrot.lane.b32.xlu1 %v1355_v43, %s1644_s27  ;;  %v1824_v2 = vld [vmem:[%s1762_s24 + $0x8] sm:$0xf] }
  0x29   : > { %v1806_v52 = vrot.slane %v460_v44, 4  ;;  %v1808_v53 = vrot.slane %v463_v45, 5  ;;  %v331_v54 = vshrl.u32 %v1782_v36, 16  ;;  %v334_v55 = vshll.u32 %v1782_v36, 16  ;;  %v292_v5 = vld [vmem:[%s1762_s24 + $0xc] sm:$0x1] }
  0x2a   : > { %v1815_v57 = vrot.slane %v474_v48, 4  ;;  %v1817_v58 = vrot.slane %v477_v49, 5  ;;  %862 = vrot.lane.b32.xlu0 %v1353_v50, %s1644_s27  ;;  %v340_v59 = vshll.u32 %v293_v46, 16  ;;  %v345_v60 = vshrl.u32 %v1791_v41, 16  ;;  %v1830_v12 = vld [vmem:[%s1762_s24 + $0x30] sm:$0xf] }
  0x2b   : > { %v333_v62 = vrot.slane %v331_v54, 4  ;;  %v336_v63 = vrot.slane %v334_v55, 5  ;;  %v348_v0 = vshll.u32 %v1791_v41, 16  ;;  %v354_v1 = vshll.u32 %v294_v51, 16  ;;  %v297_v22 = vld [vmem:[%s1762_s24 + $0x34] sm:$0x1] }
  0x2c   : > { %v342_v3 = vrot.slane %v340_v59, 5  ;;  %v347_v4 = vrot.slane %v345_v60, 4  ;;  %v303_v6 = vshrl.u32 %v1813_v56, 16  ;;  %v306_v7 = vshll.u32 %v1813_v56, 16  ;;  %v1842_v26 = vld [vmem:[%s1762_s24 + $0x38] sm:$0xf] }
  0x2d   : > { %v337_v8 = vor.u32 %v336_v63, %v333_v62  ;;  %v350_v9 = vrot.slane %v348_v0, 5  ;;  %v356_v10 = vrot.slane %v354_v1, 5  ;;  %v312_v11 = vshll.u32 %v291_v61, 16  ;;  %v298_v31 = vld [vmem:[%s1762_s24 + $0x3c] sm:$0x1] }
  0x2e   : > { %v305_v14 = vrot.slane %v303_v6, 4  ;;  %v308_v15 = vrot.slane %v306_v7, 5  ;;  %v317_v16 = vshrl.u32 %v1824_v2, 16  ;;  %v320_v17 = vshll.u32 %v1824_v2, 16  ;;  %v1856_v46 = vld [vmem:[%s1762_s24 + $0x20] sm:$0xf] }
  0x2f   : > { %v338_v18 = vrot.slane %v337_v8, 4  ;;  %v351_v19 = vor.u32 %v350_v9, %v347_v4  ;;  %v314_v20 = vrot.slane %v312_v11, 5  ;;  %v326_v21 = vshll.u32 %v292_v5, 16  ;;  %v295_v54 = vld [vmem:[%s1762_s24 + $0x24] sm:$0x1] }
  0x30   : > { %v309_v23 = vor.u32 %v308_v15, %v305_v14  ;;  %v319_v24 = vrot.slane %v317_v16, 4  ;;  %v322_v25 = vrot.slane %v320_v17, 5  ;;  %v387_v27 = vshrl.u32 %v1830_v12, 16  ;;  %v296_v5 = vld [vmem:[%s1762_s24 + $0x2c] sm:$0x1] }
  0x31   : > { %v343_v28 = vsel %vm1834_vm2, %v338_v18, %v342_v3  ;;  %v352_v29 = vrot.slane %v351_v19, 4  ;;  %v328_v30 = vrot.slane %v326_v21, 5  ;;  %v390_v35 = vshll.u32 %v1830_v12, 16  ;;  %v1867_v3 = vld [vmem:[%s1762_s24 + $0x28] sm:$0xf] }
  0x32   : > { %v310_v39 = vrot.slane %v309_v23, 4  ;;  %v323_v43 = vor.u32 %v322_v25, %v319_v24  ;;  %v389_v44 = vrot.slane %v387_v27, 4  ;;  %v396_v45 = vshll.u32 %v297_v22, 16  ;;  %v1324_v15 = vld [vmem:[%s1762_s24 + $0x2c] sm:$0x1] }
  0x33   : > { %v357_v48 = vsel %vm1834_vm2, %v352_v29, %v356_v10  ;;  %v392_v49 = vrot.slane %v390_v35, 5  ;;  %v401_v50 = vshrl.u32 %v1842_v26, 16  ;;  %v404_v51 = vshll.u32 %v1842_v26, 16  ;;  %v1325_v16 = vld [vmem:[%s1762_s24 + $0x34] sm:$0x1] }
  0x34   : > { %v1349_v55 = vcombine.low %v343_v28, %v357_v48  ;;  %v315_v59 = vsel %vm1834_vm2, %v310_v39, %v314_v20  ;;  %v324_v60 = vrot.slane %v323_v43, 4  ;;  %v398_v61 = vrot.slane %v396_v45, 5  ;;  %v1320_v21 = vld [vmem:[%s1762_s24 + $0xc] sm:$0x1]  ;;  %v1326_v45 = vld [vmem:[%s1762_s24 + $0x3c] sm:$0x1] }
  0x35   : > { %v393_v62 = vor.u32 %v392_v49, %v389_v44  ;;  %v403_v63 = vrot.slane %v401_v50, 4  ;;  %v406_v0 = vrot.slane %v404_v51, 5  ;;  %v410_v1 = vshll.u32 %v298_v31, 16  ;;  %v1321_v31 = vld [vmem:[%s1762_s24 + $0x14] sm:$0x1] }
  0x36   : > { %834 = vrot.lane.b32.xlu1 %v1349_v55, %s1645_s9  ;;  %v329_v4 = vsel %vm1834_vm2, %v324_v60, %v328_v30  ;;  %v359_v6 = vshrl.u32 %v1856_v46, 16  ;;  %v362_v7 = vshll.u32 %v1856_v46, 16  ;;  %v368_v8 = vshll.u32 %v295_v54, 16  ;;  %v1327_v60 = vld [vmem:[%s1762_s24 + $0x44] sm:$0x1] }
  0x37   : > { %v1348_v9 = vcombine.low %v315_v59, %v329_v4  ;;  %v394_v10 = vrot.slane %v393_v62, 4  ;;  %v407_v11 = vor.u32 %v406_v0, %v403_v63  ;;  %v412_v14 = vrot.slane %v410_v1, 5  ;;  %v1322_v4 = vld [vmem:[%s1762_s24 + $0x1c] sm:$0x1] }
  0x38   : > { %v361_v17 = vrot.slane %v359_v6, 4  ;;  %v364_v18 = vrot.slane %v362_v7, 5  ;;  %v370_v19 = vrot.slane %v368_v8, 5  ;;  %v373_v20 = vshrl.u32 %v1867_v3, 16 }
  0x39   : > { %832 = vrot.lane.b32.xlu0 %v1348_v9, %s1645_s9  ;;  %v399_v22 = vsel %vm1834_vm2, %v394_v10, %v398_v61  ;;  %v408_v23 = vrot.slane %v407_v11, 4  ;;  %v376_v24 = vshll.u32 %v1867_v3, 16  ;;  %v382_v25 = vshll.u32 %v296_v5, 16  ;;  %v1323_v9 = vld [vmem:[%s1762_s24 + $0x24] sm:$0x1]  ;;  %v1542_v10 = vld [vmem:[%s2194_s2 + $0x38] sm:$0xff]  }
  0x3a   : > { %v365_v27 = vor.u32 %v364_v18, %v361_v17  ;;  %v375_v28 = vrot.slane %v373_v20, 4  ;;  %v497_v29 = vshll.u32 %v1324_v15, 16  ;;  %v511_v30 = vshll.u32 %v1325_v16, 16  ;;  %v1927_v16 = vld [vmem:[%s1908_s13 + $0x20] sm:$0xf]  ;;  %s1646_s24 = smov 48   ;;  %1403 = vmatprep.subr.bf16.mxu0 %v1542_v10  ;;  %1427 = vmatprep.subr.bf16.mxu1 %v1542_v10 }
  0x3b   : > { %v413_v35 = vsel %vm1834_vm2, %v408_v23, %v412_v14  ;;  %v378_v39 = vrot.slane %v376_v24, 5  ;;  %v384_v43 = vrot.slane %v382_v25, 5  ;;  %v441_v44 = vshll.u32 %v1320_v21, 16  ;;  %1404 = vmatpush3.bf16.msra.mxu0 %v1542_v10  ;;  %1435 = vmatpush3.bf16.msra.mxu1 %v1542_v10  ;;  %v555_v10 = vld [vmem:[%s1908_s13 + $0x24] sm:$0x1] }
  0x3c   : > { %v1351_v48 = vcombine.low %v399_v22, %v413_v35  ;;  %v366_v49 = vrot.slane %v365_v27, 4  ;;  %v499_v50 = vrot.slane %v497_v29, 5  ;;  %v513_v51 = vrot.slane %v511_v30, 5  ;;  %v1945_v27 = vld [vmem:[%s1908_s13] sm:$0xf] }
  0x3d   : > { %v379_v54 = vor.u32 %v378_v39, %v375_v28  ;;  %v443_v55 = vrot.slane %v441_v44, 5  ;;  %v455_v59 = vshll.u32 %v1321_v31, 16  ;;  %v522_v61 = vor.u32 %v1779_v34, %v1777_v33  ;;  %v1953_v30 = vld [vmem:[%s1908_s13 + $0x8] sm:$0xf]  ;;  %v549_v44 = vld [vmem:[%s1908_s13 + $0x30] sm:$0xf] }
  0x3e   : > { %838 = vrot.lane.b32.xlu1 %v1351_v48, %s1645_s9  ;;  %v371_v62 = vsel %vm1834_vm2, %v366_v49, %v370_v19  ;;  %v500_v63 = vsel %vm1834_vm2, %v1784_v37, %v499_v50  ;;  %v514_v0 = vsel %vm1834_vm2, %v1775_v32, %v513_v51  ;;  %v525_v1 = vshll.u32 %v1326_v45, 16  ;;  %v1544_v51 = vld [vmem:[%s2194_s2 + $0x28] sm:$0xff]  }
  0x3f   : > { %v380_v33 = vrot.slane %v379_v54, 4  ;;  %v1358_v34 = vcombine.low %v500_v63, %v514_v0  ;;  %v444_v5 = vsel %vm1834_vm2, %v1796_v47, %v443_v55  ;;  %v457_v37 = vrot.slane %v455_v59, 5 }
  0x40   : > { %v523_v6 = vrot.slane %v522_v61, 4  ;;  %v527_v7 = vrot.slane %v525_v1, 5  ;;  %v536_v32 = vor.u32 %v1793_v42, %v1788_v40  ;;  %v539_v8 = vshll.u32 %v1327_v60, 16  ;;  %v1930_v40 = vld [vmem:[%s1908_s13 + $0x28] sm:$0xf] }
  0x41   : > { %v385_v11 = vsel %vm1834_vm2, %v380_v33, %v384_v43  ;;  %v458_v14 = vsel %vm1834_vm2, %v1786_v38, %v457_v37  ;;  %v466_v47 = vor.u32 %v1808_v53, %v1806_v52  ;;  %v469_v15 = vshll.u32 %v1322_v4, 16  ;;  %v1543_v53 = vld [vmem:[%s2194_s2 + $0x30] sm:$0xff]   ;;  %v550_v61 = vld [vmem:[%s1908_s13 + $0x38] sm:$0xf] }
  0x42   : > { %v1350_v42 = vcombine.low %v371_v62, %v385_v11  ;;  %884 = vrot.lane.b32.xlu1 %v1358_v34, %s1646_s24  ;;  %v1356_v17 = vcombine.low %v444_v5, %v458_v14  ;;  %v528_v18 = vsel %vm1834_vm2, %v523_v6, %v527_v7  ;;  %v537_v19 = vrot.slane %v536_v32, 4  ;;  %1405 = vmatprep.subr.bf16.mxu0 %v1543_v53  ;;  %v1981_v4 = vld [vmem:[%s1908_s13 + $0x10] sm:$0xf]  ;;  %v1984_v33 = vld [vmem:[%s1908_s13 + $0x18] sm:$0xf]  ;;  %v1545_v11 = vld [vmem:[%s2194_s2 + $0x20] sm:$0xff]  }
  0x43   : > { %v541_v38 = vrot.slane %v539_v8, 5  ;;  %v467_v20 = vrot.slane %v466_v47, 4  ;;  %v471_v21 = vrot.slane %v469_v15, 5  ;;  %v480_v52 = vor.u32 %v1817_v58, %v1815_v57  ;;  %1428 = vmatprep.subr.bf16.mxu1 %v1543_v53  ;;  %1406 = vmatpush3.bf16.msra.mxu0 %v1543_v53 }
  0x44   : > { %836 = vrot.lane.b32.xlu0 %v1350_v42, %s1645_s9  ;;  %v483_v22 = vshll.u32 %v1323_v9, 16  ;;  %v616_v23 = vshrl.u32 %v1927_v16, 16  ;;  %v619_v24 = vshll.u32 %v1927_v16, 16  ;;  %v630_v25 = vshrl.u32 %v1930_v40, 16  ;;  %1436 = vmatpush3.bf16.msra.mxu1 %v1543_v53  ;;  %s1649_s9 = smov 96  }
  0x45   : > { %v542_v57 = vsel %vm1834_vm2, %v537_v19, %v541_v38  ;;  %v472_v58 = vsel %vm1834_vm2, %v467_v20, %v471_v21  ;;  %v481_v28 = vrot.slane %v480_v52, 4  ;;  %v633_v29 = vshll.u32 %v1930_v40, 16  ;;  %1407 = vmatprep.subr.bf16.mxu0 %v1544_v51  ;;  %1429 = vmatprep.subr.bf16.mxu1 %v1544_v51  ;;  %v551_v38 = vld [vmem:[%s1908_s13 + $0x4] sm:$0x1] }
  0x46   : > { %v1359_v31 = vcombine.low %v528_v18, %v542_v57  ;;  %v485_v35 = vrot.slane %v483_v22, 5  ;;  %v1955_v39 = vrot.slane %v616_v23, 4  ;;  %v1957_v43 = vrot.slane %v619_v24, 5  ;;  %v552_v22 = vld [vmem:[%s1908_s13 + $0xc] sm:$0x1] }
  0x47   : > { %v1960_v45 = vrot.slane %v630_v25, 4  ;;  %v1962_v48 = vrot.slane %v633_v29, 5  ;;  %v1362_v49 = vcombine.low %v1927_v16, %v1930_v40  ;;  %v560_v50 = vshrl.u32 %v1945_v27, 16  ;;  %1408 = vmatpush3.bf16.msra.mxu0 %v1544_v51  ;;  %v556_v40 = vld [vmem:[%s1908_s13 + $0x2c] sm:$0x1] }
  0x48   : > { %880 = vrot.lane.b32.xlu0 %v1356_v17, %s1646_s24  ;;  %886 = vrot.lane.b32.xlu1 %v1359_v31, %s1646_s24  ;;  %v486_v54 = vsel %vm1834_vm2, %v481_v28, %v485_v35  ;;  %v563_v55 = vshll.u32 %v1945_v27, 16  ;;  %v574_v59 = vshrl.u32 %v1953_v30, 16  ;;  %v577_v60 = vshll.u32 %v1953_v30, 16 }
  0x49   : > { %v1357_v62 = vcombine.low %v472_v58, %v486_v54  ;;  %v562_v63 = vrot.slane %v560_v50, 4  ;;  %v1360_v0 = vcombine.low %v1945_v27, %v1953_v30  ;;  %v644_v1 = vshrl.u32 %v549_v44, 16  ;;  %1437 = vmatpush3.bf16.msra.mxu1 %v1544_v51  ;;  %1409 = vmatprep.subr.bf16.mxu0 %v1545_v11  ;;  %v557_v30 = vld [vmem:[%s1908_s13 + $0x34] sm:$0x1]  ;;  %v558_v50 = vld [vmem:[%s1908_s13 + $0x3c] sm:$0x1] }
  0x4a   : > { %v565_v34 = vrot.slane %v563_v55, 5  ;;  %v576_v5 = vrot.slane %v574_v59, 4  ;;  %v579_v37 = vrot.slane %v577_v60, 5  ;;  %v647_v6 = vshll.u32 %v549_v44, 16  ;;  %1430 = vmatprep.subr.bf16.mxu1 %v1545_v11 }
  0x4b   : > { %v646_v7 = vrot.slane %v644_v1, 4  ;;  %v658_v32 = vshrl.u32 %v550_v61, 16  ;;  %v661_v8 = vshll.u32 %v550_v61, 16  ;;  %v1363_v9 = vcombine.low %v549_v44, %v550_v61  ;;  %1410 = vmatpush3.bf16.msra.mxu0 %v1545_v11  ;;  %v1546_v44 = vld [vmem:[%s2194_s2 + $0x18] sm:$0xff]   ;;  %v553_v61 = vld [vmem:[%s1908_s13 + $0x14] sm:$0x1] }
  0x4c   : > { %882 = vrot.lane.b32.xlu0 %v1357_v62, %s1646_s24  ;;  %912 = vrot.lane.b32.xlu1 %v1362_v49, %s1647_s8  ;;  %v649_v14 = vrot.slane %v647_v6, 5  ;;  %v588_v47 = vshrl.u32 %v1981_v4, 16  ;;  %v591_v15 = vshll.u32 %v1981_v4, 16  ;;  %v602_v16 = vshrl.u32 %v1984_v33, 16  ;;  %v2026_v6 = vld [vmem:[%s1908_s13 + $0x28] sm:$0xf] }
  0x4d   : > { %v660_v42 = vrot.slane %v658_v32, 4  ;;  %v663_v17 = vrot.slane %v661_v8, 5  ;;  %v605_v18 = vshll.u32 %v1984_v33, 16  ;;  %v1361_v19 = vcombine.low %v1981_v4, %v1984_v33  ;;  %1438 = vmatpush3.bf16.msra.mxu1 %v1545_v11  ;;  %1411 = vmatprep.subr.bf16.mxu0 %v1546_v44  ;;  %v554_v4 = vld [vmem:[%s1908_s13 + $0x1c] sm:$0x1]  ;;  %s1648_s24 = smov 80  }
  0x4e   : > { %v590_v20 = vrot.slane %v588_v47, 4  ;;  %v593_v21 = vrot.slane %v591_v15, 5  ;;  %v2000_v52 = vrot.slane %v602_v16, 4  ;;  %v622_v53 = vor.u32 %v1957_v43, %v1955_v39  ;;  %1431 = vmatprep.subr.bf16.mxu1 %v1546_v44  ;;  %v1333_v11 = vld [vmem:[%s1908_s13 + $0x30] sm:$0xf] }
  0x4f   : > { %v607_v23 = vrot.slane %v605_v18, 5  ;;  %v625_v24 = vshll.u32 %v555_v10, 16  ;;  %v636_v25 = vor.u32 %v1962_v48, %v1960_v45  ;;  %v639_v27 = vshll.u32 %v556_v40, 16  ;;  %1412 = vmatpush3.bf16.msra.mxu0 %v1546_v44 }
  0x50   : > { %908 = vrot.lane.b32.xlu0 %v1360_v0, %s1647_s8  ;;  %914 = vrot.lane.b32.xlu1 %v1363_v9, %s1647_s8  ;;  %v623_v57 = vrot.slane %v622_v53, 4  ;;  %v566_v58 = vor.u32 %v565_v34, %v562_v63  ;;  %v569_v28 = vshll.u32 %v551_v38, 16  ;;  %v580_v29 = vor.u32 %v579_v37, %v576_v5  ;;  %v1329_v53 = vld [vmem:[%s1908_s13 + $0x10] sm:$0xf] }
  0x51   : > { %v627_v31 = vrot.slane %v625_v24, 5  ;;  %v637_v35 = vrot.slane %v636_v25, 4  ;;  %v641_v39 = vrot.slane %v639_v27, 5  ;;  %v583_v43 = vshll.u32 %v552_v22, 16  ;;  %1439 = vmatpush3.bf16.msra.mxu1 %v1546_v44  ;;  %v1548_v22 = vld [vmem:[%s2194_s2 + $0x8] sm:$0xff]  }
  0x52   : > { %v567_v45 = vrot.slane %v566_v58, 4  ;;  %v571_v48 = vrot.slane %v569_v28, 5  ;;  %v581_v49 = vrot.slane %v580_v29, 4  ;;  %v650_v51 = vor.u32 %v649_v14, %v646_v7  ;;  %v1547_v7 = vld [vmem:[%s2194_s2 + $0x10] sm:$0xff]  }
  0x53   : > { %v628_v54 = vsel %vm1834_vm2, %v623_v57, %v627_v31  ;;  %v642_v55 = vsel %vm1834_vm2, %v637_v35, %v641_v39  ;;  %v585_v59 = vrot.slane %v583_v43, 5  ;;  %v653_v60 = vshll.u32 %v557_v30, 16  ;;  %1413 = vmatprep.subr.bf16.mxu0 %v1547_v7  ;;  %1432 = vmatprep.subr.bf16.mxu1 %v1547_v7  ;;  %v1334_v57 = vld [vmem:[%s1908_s13 + $0x38] sm:$0xf]  ;;  %v1335_v31 = vld [vmem:[%s1908_s13 + $0x40] sm:$0xf] }
  0x54   : > { %910 = vrot.lane.b32.xlu0 %v1361_v19, %s1647_s8  ;;  %v1366_v62 = vcombine.low %v628_v54, %v642_v55  ;;  %v572_v63 = vsel %vm1834_vm2, %v567_v45, %v571_v48  ;;  %v651_v0 = vrot.slane %v650_v51, 4  ;;  %v664_v1 = vor.u32 %v663_v17, %v660_v42  ;;  %v1328_v19 = vld [vmem:[%s1908_s13 + $0x8] sm:$0xf]  ;;  %1414 = vmatpush3.bf16.msra.mxu0 %v1547_v7  ;;  %v1330_v45 = vld [vmem:[%s1908_s13 + $0x18] sm:$0xf] }
  0x55   : > { %v586_v33 = vsel %vm1834_vm2, %v581_v49, %v585_v59  ;;  %v655_v34 = vrot.slane %v653_v60, 5  ;;  %v667_v5 = vshll.u32 %v558_v50, 16  ;;  %v594_v37 = vor.u32 %v593_v21, %v590_v20  ;;  %1440 = vmatpush3.bf16.msra.mxu1 %v1547_v7  ;;  %1415 = vmatprep.subr.bf16.mxu0 %v1548_v22  ;;  %v1331_v54 = vld [vmem:[%s1908_s13 + $0x20] sm:$0xf]  ;;  %v1341_v7 = vld [vmem:[%s1908_s13 + $0x34] sm:$0x1] }
  0x56   : > { %932 = vrot.lane.b32.xlu1 %v1366_v62, %s1648_s24  ;;  %v1364_v32 = vcombine.low %v572_v63, %v586_v33  ;;  %v665_v8 = vrot.slane %v664_v1, 4  ;;  %v597_v9 = vshll.u32 %v553_v61, 16  ;;  %v608_v10 = vor.u32 %v607_v23, %v2000_v52  ;;  %1433 = vmatprep.subr.bf16.mxu1 %v1548_v22  ;;  %v1549_v62 = vld [vmem:[%s2194_s2] sm:$0xff]   ;;  %v1340_v33 = vld [vmem:[%s1908_s13 + $0x2c] sm:$0x1] }
  0x57   : > { %v656_v14 = vsel %vm1834_vm2, %v651_v0, %v655_v34  ;;  %v669_v47 = vrot.slane %v667_v5, 5  ;;  %v595_v15 = vrot.slane %v594_v37, 4  ;;  %v611_v16 = vshll.u32 %v554_v4, 16 }
  0x58   : > { %928 = vrot.lane.b32.xlu0 %v1364_v32, %s1648_s24  ;;  %v599_v40 = vrot.slane %v597_v9, 5  ;;  %v609_v42 = vrot.slane %v608_v10, 4  ;;  %v745_v17 = vshrl.u32 %v2026_v6, 16  ;;  %v748_v18 = vshll.u32 %v2026_v6, 16  ;;  %1416 = vmatpush3.bf16.msra.mxu0 %v1548_v22 }
  0x59   : > { %v670_v38 = vsel %vm1834_vm2, %v665_v8, %v669_v47  ;;  %v613_v20 = vrot.slane %v611_v16, 5  ;;  %v759_v21 = vshrl.u32 %v1333_v11, 16  ;;  %v762_v52 = vshll.u32 %v1333_v11, 16  ;;  %1441 = vmatpush3.bf16.msra.mxu1 %v1548_v22  ;;  %1417 = vmatprep.subr.bf16.mxu0 %v1549_v62 }
  0x5a   : > { %v1367_v23 = vcombine.low %v656_v14, %v670_v38  ;;  %v600_v24 = vsel %vm1834_vm2, %v595_v15, %v599_v40  ;;  %v747_v25 = vrot.slane %v745_v17, 4  ;;  %v750_v27 = vrot.slane %v748_v18, 5  ;;  %1434 = vmatprep.subr.bf16.mxu1 %v1549_v62  ;;  %v1337_v40 = vld [vmem:[%s1908_s13 + $0x14] sm:$0x1] }
  0x5b   : > { %v614_v58 = vsel %vm1834_vm2, %v609_v42, %v613_v20  ;;  %v761_v28 = vrot.slane %v759_v21, 4  ;;  %v764_v29 = vrot.slane %v762_v52, 5  ;;  %v1370_v30 = vcombine.low %v2026_v6, %v1333_v11  ;;  %v1336_v11 = vld [vmem:[%s1908_s13 + $0xc] sm:$0x1] }
  0x5c   : > { %934 = vrot.lane.b32.xlu1 %v1367_v23, %s1648_s24  ;;  %v1365_v35 = vcombine.low %v600_v24, %v614_v58  ;;  %v689_v39 = vshrl.u32 %v1328_v19, 16  ;;  %v692_v43 = vshll.u32 %v1328_v19, 16  ;;  %v703_v44 = vshrl.u32 %v1329_v53, 16  ;;  %1418 = vmatpush3.bf16.msra.mxu0 %v1549_v62 }
  0x5d   : > { %v706_v48 = vshll.u32 %v1329_v53, 16  ;;  %v1368_v49 = vcombine.low %v1328_v19, %v1329_v53  ;;  %v773_v50 = vshrl.u32 %v1334_v57, 16  ;;  %v776_v51 = vshll.u32 %v1334_v57, 16  ;;  %1442 = vmatpush3.bf16.msra.mxu1 %v1549_v62  ;;  %v1342_v53 = vld [vmem:[%s1908_s13 + $0x3c] sm:$0x1] }
  0x5e   : > { %930 = vrot.lane.b32.xlu0 %v1365_v35, %s1648_s24  ;;  %v691_v55 = vrot.slane %v689_v39, 4  ;;  %v694_v59 = vrot.slane %v692_v43, 5  ;;  %v705_v60 = vrot.slane %v703_v44, 4  ;;  %v787_v61 = vshrl.u32 %v1335_v31, 16  ;;  %v1338_v43 = vld [vmem:[%s1908_s13 + $0x1c] sm:$0x1]  ;;  %s1195_s24 = sadd.s32 %s1387_s23, %s1386_s14 }
  0x5f   : > { %v708_v63 = vrot.slane %v706_v48, 5  ;;  %v775_v0 = vrot.slane %v773_v50, 4  ;;  %v778_v1 = vrot.slane %v776_v51, 5  ;;  %v790_v4 = vshll.u32 %v1335_v31, 16  ;;  %v1339_v50 = vld [vmem:[%s1908_s13 + $0x24] sm:$0x1] }
  0x60   : > { %960 = vrot.lane.b32.xlu1 %v1370_v30, %s1649_s9  ;;  %v789_v34 = vrot.slane %v787_v61, 4  ;;  %v1371_v5 = vcombine.low %v1334_v57, %v1335_v31  ;;  %v717_v37 = vshrl.u32 %v1330_v45, 16  ;;  %v720_v6 = vshll.u32 %v1330_v45, 16  ;;  %s1388_s30 = sshll.u32 %s1195_s24, 7 }
  0x61   : > { %v792_v32 = vrot.slane %v790_v4, 5  ;;  %v731_v8 = vshrl.u32 %v1331_v54, 16  ;;  %v734_v9 = vshll.u32 %v1331_v54, 16  ;;  %v1369_v10 = vcombine.low %v1330_v45, %v1331_v54  ;;  %s2135_s6 = scalar_lea.hbm %s2196_s4, %s1388_s30 }
  0x62   : > { %956 = vrot.lane.b32.xlu0 %v1368_v49, %s1649_s9  ;;  %v719_v14 = vrot.slane %v717_v37, 4  ;;  %v722_v47 = vrot.slane %v720_v6, 5  ;;  %v751_v15 = vor.u32 %v750_v27, %v747_v25  ;;  %v754_v16 = vshll.u32 %v1340_v33, 16 }
  0x63   : > { %v733_v42 = vrot.slane %v731_v8, 4  ;;  %v736_v17 = vrot.slane %v734_v9, 5  ;;  %v765_v18 = vor.u32 %v764_v29, %v761_v28  ;;  %v768_v19 = vshll.u32 %v1341_v7, 16  ;;  %v1343_v28 = vld [vmem:[%s1908_s13 + $0x44] sm:$0x1]  ;;  %s242_s13 = sand.u32 1, %s1618_s16  }
  0x64   : > { %962 = vrot.lane.b32.xlu1 %v1371_v5, %s1649_s9  ;;  %v752_v38 = vrot.slane %v751_v15, 4  ;;  %v756_v20 = vrot.slane %v754_v16, 5  ;;  %v695_v21 = vor.u32 %v694_v59, %v691_v55  ;;  %v698_v52 = vshll.u32 %v1336_v11, 16  ;;  %s1309_s8 = sshll.u32 %s242_s13, 6 }
  0x65   : > { %v766_v22 = vrot.slane %v765_v18, 4  ;;  %v770_v23 = vrot.slane %v768_v19, 5  ;;  %v709_v24 = vor.u32 %v708_v63, %v705_v60  ;;  %v712_v25 = vshll.u32 %v1337_v40, 16  ;;  %s244_s27 = scalar_lea.vmem [#allocation2], %s1309_s8  ;;  %s1651_s8 = smov [#allocation2]  }
  0x66   : > { %958 = vrot.lane.b32.xlu0 %v1369_v10, %s1649_s9  ;;  %v757_v27 = vsel %vm1834_vm2, %v752_v38, %v756_v20  ;;  %v696_v57 = vrot.slane %v695_v21, 4  ;;  %v700_v58 = vrot.slane %v698_v52, 5  ;;  %v779_v29 = vor.u32 %v778_v1, %v775_v0  ;;  %s1198_s5 = sshll.u32 %s244_s27, 4  ;;  %s2141_s9 = scalar_lea.sflag [#allocation3], %s242_s13  ;;  %s2137_s5 = int_to_ptr.vmem [resolvable:$true] %s1198_s5 }
  0x67   : > { %v771_v30 = vsel %vm1834_vm2, %v766_v22, %v770_v23  ;;  %v710_v31 = vrot.slane %v709_v24, 4  ;;  %v714_v35 = vrot.slane %v712_v25, 5  ;;  %v782_v39 = vshll.u32 %v1342_v53, 16  ;;  %s1554_s10 = sshll.u32 %s1651_s8, 4  ;;  %s1555_s10 = int_to_ptr.vmem [resolvable:$false] %s1554_s10 }
  0x68   : > { %v1374_v44 = vcombine.low %v757_v27, %v771_v30  ;;  %v701_v45 = vsel %vm1834_vm2, %v696_v57, %v700_v58  ;;  %v780_v48 = vrot.slane %v779_v29, 4  ;;  %v793_v49 = vor.u32 %v792_v32, %v789_v34  ;;  %s1556_s12 = scalar_lea.vmem %s1555_s10, 2048  ;;  %p1557_p5 = scmp.lt.s32.totalorder %s2137_s5, %s1555_s10 }
  0x69   : > { %v715_v51 = vsel %vm1834_vm2, %v710_v31, %v714_v35  ;;  %v784_v54 = vrot.slane %v782_v39, 5  ;;  %v796_v55 = vshll.u32 %v1343_v28, 16  ;;  %v723_v59 = vor.u32 %v722_v47, %v719_v14 }
  0x6a   : > { %980 = vrot.lane.b32.xlu1 %v1374_v44, %s1650_s11  ;;  %v1372_v60 = vcombine.low %v701_v45, %v715_v51  ;;  %v794_v61 = vrot.slane %v793_v49, 4  ;;  %v726_v62 = vshll.u32 %v1338_v43, 16  ;;  %v737_v63 = vor.u32 %v736_v17, %v733_v42 }
  0x6b   : > { %v785_v0 = vsel %vm1834_vm2, %v780_v48, %v784_v54  ;;  %v798_v1 = vrot.slane %v796_v55, 5  ;;  %v724_v4 = vrot.slane %v723_v59, 4  ;;  %v740_v33 = vshll.u32 %v1339_v50, 16 }
  0x6c   : > { %976 = vrot.lane.b32.xlu0 %v1372_v60, %s1650_s11  ;;  %v728_v34 = vrot.slane %v726_v62, 5  ;;  %v738_v5 = vrot.slane %v737_v63, 4  ;;  %v1344_v37 = vcombine.low %v1813_v56, %v1824_v2  ;;  %v1347_v32 = vcombine.low %v1830_v12, %v1842_v26 }
  0x6d   : > { %v799_v6 = vsel %vm1834_vm2, %v794_v61, %v798_v1  ;;  %v742_v7 = vrot.slane %v740_v33, 5  ;;  %v1346_v8 = vcombine.low %v1856_v46, %v1867_v3  ;;  %v1345_v28 = vcombine.low %v1782_v36, %v1791_v41 }
  0x6e   : > { %v1375_v9 = vcombine.low %v785_v0, %v799_v6  ;;  %v729_v10 = vsel %vm1834_vm2, %v724_v4, %v728_v34 }
  0x6f   : > { %v743_v11 = vsel %vm1834_vm2, %v738_v5, %v742_v7  ;;  %v1376_v7 = vld [vmem:[%s2195_s3] ss:$0 sm:$0xff] }
  0x70   : > { %982 = vrot.lane.b32.xlu1 %v1375_v9, %s1650_s11  ;;  %v1373_v14 = vcombine.low %v729_v10, %v743_v11 }
  0x72   : > { %978 = vrot.lane.b32.xlu0 %v1373_v14, %s1650_s11  ;;  %s1550_s11 = scalar_lea.vmem %s2137_s5, 1024 }
  0x73   : > { %p1551_p1 = scmp.ne.s32.totalorder %s2137_s5, %s1550_s11  ;;  %p1558_p6 = scmp.lt.s32.totalorder %s1556_s12, %s1550_s11 }
  0x75   : > { %p1552_p2 = pnand %p1551_p1, %p1730_p3  ;;  %p1559_p7 = por %p1558_p6, %p1557_p5 }
  0x77   : > { %p1553_p4 = pneg %p1552_p2 }
  0x79   : > { %p1560_p9 = pnand %p1559_p7, %p1553_p4 }
  0x93   : > { %v865_v56 = vpop.permute.xlu1 %864 }
  0x95   : > { %v861_v2 = vpop.permute.xlu0 %860 }
  0x9a   : > { %v867_v47 = vpop.permute.xlu1 %866 }
  0x9c   : > { %v863_v15 = vpop.permute.xlu0 %862 }
  0xa8   : > { %v835_v16 = vpop.permute.xlu1 %834 }
  0xa9   : > { %v990_v36 = vsel %vm984_vm3, %v1345_v28, %v835_v16 }
  0xaa   : > { %v1001_v60 = vsel %vm997_vm5, %v990_v36, %v863_v15 }
  0xab   : > { %v833_v40 = vpop.permute.xlu0 %832 }
  0xac   : > { %v987_v27 = vsel %vm984_vm3, %v1344_v37, %v833_v40 }
  0xad   : > { %v999_v30 = vsel %vm997_vm5, %v987_v27, %v861_v2 }
  0xb0   : > { %v839_v12 = vpop.permute.xlu1 %838 }
  0xb1   : > { %v996_v35 = vsel %vm984_vm3, %v1347_v32, %v839_v12 }
  0xb2   : > { %v1005_v50 = vsel %vm997_vm5, %v996_v35, %v867_v47 }
  0xb4   : > { %v885_v26 = vpop.permute.xlu1 %884 }
  0xb6   : > { %v837_v42 = vpop.permute.xlu0 %836 }
  0xb7   : > { %v993_v24 = vsel %vm984_vm3, %v1346_v8, %v837_v42 }
  0xb8   : > { %v1003_v57 = vsel %vm997_vm5, %v993_v24, %v865_v56 }
  0xb9   : > { %v1012_v29 = vsel %vm1006_vm4, %v1003_v57, %v885_v26 }
  0xba   : > { %v881_v46 = vpop.permute.xlu0 %880  ;;  %v887_v3 = vpop.permute.xlu1 %886 }
  0xbb   : > { %v1008_v39 = vsel %vm1006_vm4, %v999_v30, %v881_v46  ;;  %v1014_v55 = vsel %vm1006_vm4, %v1005_v50, %v887_v3 }
  0xbe   : > { %v883_v17 = vpop.permute.xlu0 %882  ;;  %v913_v18 = vpop.permute.xlu1 %912 }
  0xbf   : > { %v1021_v31 = vsel %vm1015_vm6, %v1012_v29, %v913_v18  ;;  %v1010_v62 = vsel %vm1006_vm4, %v1001_v60, %v883_v17 }
  0xc2   : > { %v909_v19 = vpop.permute.xlu0 %908  ;;  %v915_v38 = vpop.permute.xlu1 %914 }
  0xc3   : > { %v1017_v44 = vsel %vm1015_vm6, %v1008_v39, %v909_v19  ;;  %v1023_v61 = vsel %vm1015_vm6, %v1014_v55, %v915_v38 }
  0xc6   : > { %v911_v13 = vpop.permute.xlu0 %910 }
  0xc7   : > { %v1019_v0 = vsel %vm1015_vm6, %v1010_v62, %v911_v13 }
  0xc8   : > { %v933_v20 = vpop.permute.xlu1 %932 }
  0xc9   : > { %v1030_v43 = vsel %vm1024_vm7, %v1021_v31, %v933_v20 }
  0xca   : > { %v929_v21 = vpop.permute.xlu0 %928 }
  0xcb   : > { %v1026_v41 = vsel %vm1024_vm7, %v1017_v44, %v929_v21 }
  0xce   : > { %v935_v52 = vpop.permute.xlu1 %934 }
  0xcf   : > { %v1032_v63 = vsel %vm1024_vm7, %v1023_v61, %v935_v52 }
  0xd0   : > { %v931_v53 = vpop.permute.xlu0 %930 }
  0xd1   : > { %v1028_v33 = vsel %vm1024_vm7, %v1019_v0, %v931_v53 }
  0xd2   : > { %v961_v22 = vpop.permute.xlu1 %960 }
  0xd3   : > { %v1039_v45 = vsel %vm1033_vm8, %v1030_v43, %v961_v22 }
  0xd4   : > { %v957_v23 = vpop.permute.xlu0 %956 }
  0xd5   : > { %v1035_v51 = vsel %vm1033_vm8, %v1026_v41, %v957_v23 }
  0xd6   : > { %v963_v25 = vpop.permute.xlu1 %962 }
  0xd7   : > { %v1041_v1 = vsel %vm1033_vm8, %v1032_v63, %v963_v25 }
  0xd8   : > { %v959_v58 = vpop.permute.xlu0 %958 }
  0xd9   : > { %v1037_v5 = vsel %vm1033_vm8, %v1028_v33, %v959_v58 }
  0xdc   : > { %v981_v48 = vpop.permute.xlu1 %980 }
  0xdd   : > { %v1050_v49 = vsel %vm1042_vm9, %v1039_v45, %v981_v48 }
  0xde   : > { %v977_v54 = vpop.permute.xlu0 %976  ;;  %1423 = vmatprep.mubr.bf16.mxu1 %v1050_v49 }
  0xdf   : > { %v1044_v59 = vsel %vm1042_vm9, %v1035_v51, %v977_v54 }
  0xe0   : > { %1419 = vmatprep.mubr.bf16.mxu0 %v1044_v59 }
  0xe2   : > { %v983_v4 = vpop.permute.xlu1 %982 }
  0xe3   : > { %v1053_v34 = vsel %vm1042_vm9, %v1041_v1, %v983_v4 }
  0xe4   : > { %v979_v37 = vpop.permute.xlu0 %978  ;;  %1424 = vmatmul.mubr.bf16.vlgmr.msra.gmra.mxu1 %v1053_v34 }
  0xe5   : > { %v1047_v6 = vsel %vm1042_vm9, %v1037_v5, %v979_v37 }
  0xe6   : > { %1420 = vmatmul.mubr.bf16.vlgmr.msra.gmra.mxu0 %v1047_v6 }
 0x1a4   : > { %v1425_v32 = vpop.f32.mrf.mxu1 }
 0x1a5   : > { %v1168_v8 = vadd.f32 %v1425_v32, %v1376_v7 }
 0x1a6   : > { %v1421_v9 = vpop.f32.mrf.mxu0  ;;  %v1159_v10 = vpop.f32.mrf.mxu1 }
 0x1a7   : > { %v1152_v11 = vadd.f32 %v1421_v9, %v1376_v7  ;;  %1180 = vst [vmem:[%s244_s27 + $0x30] sm:$0xff] %v1168_v8  ;;  %v1160_v14 = vadd.f32 %v1376_v7, %v1159_v10 }
 0x1a8   : > { %v1143_v56 = vpop.f32.mrf.mxu0  ;;  %v1426_v2 = vpop.f32.mrf.mxu1 }
 0x1a9   : > { %1176 = vst [vmem:[%s244_s27 + $0x10] sm:$0xff] %v1152_v11  ;;  %v1144_v47 = vadd.f32 %v1376_v7, %v1143_v56  ;;  %1178 = vst [vmem:[%s244_s27 + $0x20] sm:$0xff] %v1160_v14  ;;  %v1171_v15 = vadd.f32 %v1426_v2, %v1376_v7 }
 0x1aa   : > { %v1422_v16 = vpop.f32.mrf.mxu0  ;;  %v1162_v40 = vpop.f32.mrf.mxu1 }
 0x1ab   : > { %1174 = vst [vmem:[%s244_s27] sm:$0xff] %v1144_v47  ;;  %v1155_v12 = vadd.f32 %v1422_v16, %v1376_v7  ;;  %1181 = vst [vmem:[%s244_s27 + $0x38] sm:$0xff] %v1171_v15  ;;  %v1163_v26 = vadd.f32 %v1376_v7, %v1162_v40 }
 0x1ac   : > { %v1146_v42 = vpop.f32.mrf.mxu0 }
 0x1ad   : > { %1177 = vst [vmem:[%s244_s27 + $0x18] sm:$0xff] %v1155_v12  ;;  %v1147_v46 = vadd.f32 %v1376_v7, %v1146_v42  ;;  %1179 = vst [vmem:[%s244_s27 + $0x28] sm:$0xff] %v1163_v26 }
 0x1af   : > { %1175 = vst [vmem:[%s244_s27 + $0x8] sm:$0xff] %v1147_v46 }
 0x1b0   : > { %1563 = shalt.err (!%p1560_p9)
}
 0x1b1   : > { %s1564_s13 = scalar_lea.hbm %s2135_s6, 1024  ;;  %s1568_s24 = scalar_lea.hbm %s2196_s4, 8192 }
 0x1b2   : > { %p1565_p10 = scmp.ne.s32.totalorder %s2135_s6, %s1564_s13  ;;  %p1569_p13 = scmp.lt.s32.totalorder %s2135_s6, %s2196_s4 }
 0x1b3   : > { %p1570_p0 = scmp.lt.s32.totalorder %s1568_s24, %s1564_s13 }
 0x1b4   : > { %p1566_p11 = pnand %p1565_p10, %p1730_p3 }
 0x1b5   : > { %p1571_p1 = por %p1570_p0, %p1569_p13 }
 0x1b6   : > { %p1567_p12 = pneg %p1566_p11 }
 0x1b8   : > { %p1572_p2 = pnand %p1571_p1, %p1567_p12 }
 0x1ba   : > { %1575 = shalt.err (!%p1572_p2)
}
 0x1bb   : > { %s1652_s18 = smov 128   ;;  %s1653_s19 = smov 8  }
 0x1bc   : > { %1446 = dma.vmem_to_hbm [thread:$0]  (%p1730_p3), %s2137_s5, 1024, %s2135_s6, %s2141_s9, %s1652_s18, %s1652_s18, %s1653_s19  }
 0x1bd PF: > { %p1452_p4 = scmp.ge.s32.totalorder %s1642_s22, 2  ;;  %s1213_s11 = sand.u32 1, %s1614_s15  }
 0x1be   : > { %s1214_s8 = scalar_lea.sflag [#allocation3], %s1213_s11 }
 0x1bf   : > { %p1449_p5 = pnand %p1452_p4, %p1739_p8 }
 0x1c1   : > { %p1450_p6 = pneg %p1449_p5 }
 0x1c3   : > { %1609 = dma.done.wait (%p1450_p6), %s1214_s8, 1024  }
 0x1c4   : > { %1611 = vsyncadd (%p1450_p6), %s1214_s8, 4294966272  ;;  %s17_s22 = sadd.s32 1, %s1642_s22   ;;  %s2202_s15 = smov %s1618_s16 }
 0x1c5   : > { %p14_p7 = scmp.ge.s32.totalorder %s17_s22, 10   ;;  %s2203_s16 = smov %s1622_s17 }
 0x1c6   : > { %s2204_s17 = smov %s1748_s7  ;;  %s2205_s18 = smov %s1634_s20 }
 0x1c7   : > { %s2206_s19 = smov %s1638_s21  ;;  %s2207_s20 = smov %s2210_s25 }
 0x1c8   : > { %s2208_s21 = smov %s2214_s26  ;;  %16 = sbr.rel (!%p14_p7) target bundleno = 5 (0x5), region = 76 }
 0x1cd   :  { %1219 = vsyncpa [#allocation3], 1 }
 0x1ce   :  { %1221 = vsyncpa [#allocation3 + $0x1], 1 }

</bundles_post_ra>
